<compile_context>
chip_gen: v5e
topology: v5e:2x2
jax: 0.10.0
libtpu: 0.0.40
codegen_flags: <defaults>
</compile_context>

<pallas_src>
import functools
import math

import jax
import jax.numpy as jnp
from jax.experimental import pallas as pl
from jax.experimental.pallas import tpu as pltpu


# ----------------------------------------------------------------------------
# Kernel
# ----------------------------------------------------------------------------
def _embed_kernel(ids_ref, tab_ref, out_ref, *, vocab_tile, scale):
    """Grid = (token_tiles, vocab_tiles).  Accumulates into the resident out tile."""
    v = pl.program_id(1)

    @pl.when(v == 0)
    def _():
        out_ref[...] = jnp.zeros_like(out_ref)

    ids = ids_ref[...]  # (tok_tile, 1) int32, sublane-aligned column of token ids
    tok_tile = ids.shape[0]

    # Global vocab index covered by this vocab tile.
    vocab_idx = (
        jax.lax.broadcasted_iota(jnp.int32, (tok_tile, vocab_tile), 1)
        + v * vocab_tile
    )
    onehot = (vocab_idx == ids).astype(jnp.float32)  # (tok_tile, vocab_tile)

    # One-hot row-select on the MXU; HIGHEST precision keeps the f32 rows exact.
    partial = jnp.dot(
        onehot,
        tab_ref[...],
        preferred_element_type=jnp.float32,
        precision=jax.lax.Precision.HIGHEST,
    )
    out_ref[...] += partial * scale


# ----------------------------------------------------------------------------
# Wrapper
# ----------------------------------------------------------------------------
def _round_up(n, m):
    return ((n + m - 1) // m) * m


def text_embedding_forward(x, table, *, tok_tile=64, vocab_tile=128):
    """x: int32 token ids of any shape; table: (vocab, d_model) float32.

    Returns table[x] * sqrt(d_model) with shape x.shape + (d_model,).
    """
    vocab, d_model = table.shape
    scale = math.sqrt(d_model)

    ids = x.reshape(-1).astype(jnp.int32)
    n = ids.shape[0]

    n_pad = _round_up(max(n, tok_tile), tok_tile)
    v_pad = _round_up(max(vocab, vocab_tile), vocab_tile)

    # Pad tokens with id 0 (maps to the zero padding row) and pad the table
    # with zero rows (never matched since ids < vocab).
    ids_p = jnp.pad(ids, (0, n_pad - n)).reshape(n_pad, 1)
    tab_p = jnp.pad(table, ((0, v_pad - vocab), (0, 0)))

    grid = (n_pad // tok_tile, v_pad // vocab_tile)

    out = pl.pallas_call(
        functools.partial(_embed_kernel, vocab_tile=vocab_tile, scale=scale),
        out_shape=jax.ShapeDtypeStruct((n_pad, d_model), jnp.float32),
        grid=grid,
        in_specs=[
            # Token-id column: new tile per token step, reused across vocab steps.
            pl.BlockSpec((tok_tile, 1), lambda t, v: (t, 0)),
            # Embedding table: streamed in vocab_tile chunks along the reduction axis.
            pl.BlockSpec((vocab_tile, d_model), lambda t, v: (v, 0)),
        ],
        # Output block index ignores v -> stays resident in VMEM as accumulator.
        out_specs=pl.BlockSpec((tok_tile, d_model), lambda t, v: (t, 0)),
        compiler_params=pltpu.CompilerParams(
            dimension_semantics=("parallel", "arbitrary"),
        ),
    )(ids_p, tab_p)

    return out[:n].reshape(x.shape + (d_model,))


# ----------------------------------------------------------------------------
# Main
# ----------------------------------------------------------------------------
if __name__ == "__main__":
    VOCAB, D_MODEL = 200, 32
    B, T = 4, 32

    root = jax.random.PRNGKey(0)
    k_tab, k_ids = jax.random.split(root)

    # nn.Embedding(vocab, d_model, padding_idx=0): row 0 is zeroed at init.
    table = jax.random.normal(k_tab, (VOCAB, D_MODEL), jnp.float32)
    table = table.at[0].set(0.0)

    x = jax.random.randint(k_ids, (B, T), 0, VOCAB, dtype=jnp.int32)

    out = text_embedding_forward(x, table)
    out = jax.block_until_ready(out)

    # Reference: plain lookup * sqrt(d_model)
    ref = jnp.take(table, x, axis=0) * math.sqrt(D_MODEL)

    assert out.shape == (B, T, D_MODEL)
    assert bool(jnp.all(jnp.isfinite(out)))
    assert bool(jnp.allclose(out, ref, atol=1e-3, rtol=1e-3))
    print("KERNEL_OK")
</pallas_src>

<mosaic_0001>
module attributes {stable_mosaic.version = 11 : i64} {
  func.func @_embed_kernel(%arg0: i32, %arg1: i32, %arg2: memref<64x1xi32, #tpu.memory_space<vmem>>, %arg3: memref<128x32xf32, #tpu.memory_space<vmem>>, %arg4: memref<64x32xf32, #tpu.memory_space<vmem>>) attributes {dimension_semantics = [#tpu.dimension_semantics<parallel>, #tpu.dimension_semantics<arbitrary>], iteration_bounds = array<i64: 2, 2>, scalar_prefetch = 0 : i64, scratch_operands = 0 : i64, tpu.core_type = #tpu.core_type<tc>, window_params = [{transform_indices = @transform_0, window_bounds = array<i64: 64, 1>}, {transform_indices = @transform_1, window_bounds = array<i64: 128, 32>}, {transform_indices = @transform_2, window_bounds = array<i64: 64, 32>}]} {
    %c0_i32 = arith.constant 0 : i32
    %0 = arith.cmpi eq, %arg1, %c0_i32 : i32
    %1 = arith.extui %0 : i1 to i32
    %c0_i32_0 = arith.constant 0 : i32
    %2 = arith.cmpi ne, %1, %c0_i32_0 : i32
    scf.if %2 {
      %cst_9 = arith.constant 0.000000e+00 : f32
      %19 = vector.broadcast %cst_9 : f32 to vector<64x32xf32>
      %c0_10 = arith.constant 0 : index
      %c0_11 = arith.constant 0 : index
      %20 = vector.load %arg4[%c0_10, %c0_11] : memref<64x32xf32, #tpu.memory_space<vmem>>, vector<64x32xf32>
      tpu.vector_store %arg4[%c0_10, %c0_11], %19 {strides = array<i32>} : memref<64x32xf32, #tpu.memory_space<vmem>>, vector<64x32xf32>,
    } else {
    }
    %c0 = arith.constant 0 : index
    %c0_1 = arith.constant 0 : index
    %3 = vector.load %arg2[%c0, %c0_1] : memref<64x1xi32, #tpu.memory_space<vmem>>, vector<64x1xi32>
    %4 = tpu.iota {dimensions = array<i32: 1>} : vector<64x128xi32>
    %c128_i32 = arith.constant 128 : i32
    %5 = arith.muli %arg1, %c128_i32 : i32
    %6 = vector.broadcast %5 : i32 to vector<64x128xi32>
    %7 = arith.addi %4, %6 : vector<64x128xi32>
    %8 = vector.broadcast %3 : vector<64x1xi32> to vector<64x128xi32>
    %9 = arith.cmpi eq, %7, %8 : vector<64x128xi32>
    %10 = arith.extui %9 : vector<64x128xi1> to vector<64x128xi32>
    %11 = arith.sitofp %10 : vector<64x128xi32> to vector<64x128xf32>
    %c0_2 = arith.constant 0 : index
    %c0_3 = arith.constant 0 : index
    %12 = vector.load %arg3[%c0_2, %c0_3] : memref<128x32xf32, #tpu.memory_space<vmem>>, vector<128x32xf32>
    %cst = arith.constant dense<0.000000e+00> : vector<64x32xf32>
    %13 = tpu.matmul %11, %12, %cst {dimension_numbers = #tpu.dot_dimension_numbers<[1], [0], [0], [1], [0, 0, 1, 1], [], []>, precision = #tpu.contract_precision<fp32>} : vector<64x128xf32>, vector<128x32xf32>, vector<64x32xf32> -> vector<64x32xf32>
    %c0_4 = arith.constant 0 : index
    %c0_5 = arith.constant 0 : index
    %14 = vector.load %arg4[%c0_4, %c0_5] : memref<64x32xf32, #tpu.memory_space<vmem>>, vector<64x32xf32>
    %cst_6 = arith.constant 5.65685415 : f32
    %15 = vector.broadcast %cst_6 : f32 to vector<64x32xf32>
    %16 = arith.mulf %13, %15 : vector<64x32xf32>
    %17 = arith.addf %14, %16 : vector<64x32xf32>
    %c0_7 = arith.constant 0 : index
    %c0_8 = arith.constant 0 : index
    %18 = vector.load %arg4[%c0_7, %c0_8] : memref<64x32xf32, #tpu.memory_space<vmem>>, vector<64x32xf32>
    tpu.vector_store %arg4[%c0_7, %c0_8], %17 {strides = array<i32>} : memref<64x32xf32, #tpu.memory_space<vmem>>, vector<64x32xf32>,
    return
  }
  func.func @transform_0(%arg0: i32, %arg1: i32) -> (i32, i32) {
    %c0_i32 = arith.constant 0 : i32
    %c0_i32_0 = arith.constant 0 : i32
    return %arg0, %c0_i32 : i32, i32
  }
  func.func @transform_1(%arg0: i32, %arg1: i32) -> (i32, i32) {
    %c0_i32 = arith.constant 0 : i32
    %c0_i32_0 = arith.constant 0 : i32
    return %arg1, %c0_i32 : i32, i32
  }
  func.func @transform_2(%arg0: i32, %arg1: i32) -> (i32, i32) {
    %c0_i32 = arith.constant 0 : i32
    %c0_i32_0 = arith.constant 0 : i32
    return %arg0, %c0_i32 : i32, i32
  }
}

</mosaic_0001>

<bundles_post_ra>
// kernel: tpu_custom_call.1
= control target key start
LH: loop header
LB: loop body
LE: loop exit
PB: predicated region body
PF: predicated region fallthrough
CT: control target
= control target key end

     0   :  { %s1127_s9 = smov 0   ;;  %s1129_s10 = smov 0   ;;  %s1690_s0 = inlined_call_operand.vmem [shape: s32[128,1], index: 0, kind: input, shape index: {}]   ;;  %s1691_s1 = inlined_call_operand.vmem [shape: f32[256,32], index: 1, kind: input, shape index: {}]   ;;  %s1692_s2 = inlined_call_operand.vmem [shape: f32[128,32], index: 2, kind: output, shape index: {}]  }
   0x1   :  { %s1131_s11 = smov 0   ;;  %s1133_s12 = smov 0  }
   0x2   :  { %s1135_s13 = smov 0  }
   0x3 LB: > { %s21_s14 = sadd.s32 1, %s1098_s11  ;;  %s24_s15 = sadd.s32 1, %s1102_s12  ;;  %s1106_s13 = sphi %s1135_s13, %s12_s13   ;;  %s1102_s12 = sphi %s1133_s12, %s1696_s12   ;;  %s1098_s11 = sphi %s1131_s11, %s1695_s11   ;;  %s1094_s10 = sphi %s1129_s10, %s1694_s10   ;;  %s1090_s9 = sphi %s1127_s9, %s1693_s9  }
   0x4   : > { %p22_p0 = scmp.ge.s32.totalorder %s21_s14, 2  ;;  %p946_p1 = scmp.ge.s32.totalorder %s1106_s13, 1 }
   0x5   : > { %p136_p2 = scmp.lt.s32.totalorder %s1106_s13, 5 }
   0x6   : > { %s1698_s14 = smov (%p22_p0, %s21_s14), 0  ;;  %s1700_s15 = smov (!%p22_p0, %s24_s15), %s1102_s12 }
   0x7   : > { %p137_p3 = pnand %p946_p1, %p136_p2  ;;  %p26_p4 = scmp.ge.s32.totalorder %s1700_s15, 2 }
   0x8   : > { %s947_s16 = sshll.u32 (!%p137_p3), %s1094_s10, 3  ;;  %s949_s17 = sshll.u32 (!%p137_p3), %s1090_s9, 4 }
   0x9   : > { %s1702_s15 = smov (%p26_p4, %s1700_s15), 0  ;;  %140 = sbr.rel (%p137_p3) target bundleno = 391 (0x187), region = 28 }
   0xa   : > { %p164_p5 = scmp.lt.s32.totalorder (!%p137_p3), %s947_s16, 15  ;;  %p170_p6 = scmp.lt.s32.totalorder (!%p137_p3), %s949_s17, 31 }
   0xb   : > { %p953_p7 = scmp.ne.s32.totalorder (!%p137_p3), %s1090_s9, 0 }
   0xe   : > { %s1704_s16 = smov (!%p164_p5, %s947_s16), 15  ;;  %s1706_s17 = smov (!%p170_p6, %s949_s17), 31 }
   0xf   : > { %s948_s18 = sshll.u32 %s1704_s16, 3  ;;  %s950_s22 = sshll.u32 %s1706_s17, 3 }
  0x10   : > { %s1163_s21 = scalar_lea.vmem %s1690_s0, %s948_s18  ;;  %s1168_s25 = scalar_lea.vmem %s1691_s1, %s950_s22 }
  0x11   : > { %s1173_s28 = scalar_lea.vmem %s1692_s2, %s948_s18  ;;  %184 = sbr.rel (%p953_p7) target bundleno = 31 (0x1f), region = 32 }
  0x16   : > { %vm185_vm0 = vcmask 261120   ;;  %v1108_v0 = vmov 0.0  }
  0x17   : > { %186 = vst.msk [vmem:[%s1173_s28] sm:$0xff] %vm185_vm0, %v1108_v0 }
  0x18   : > { %187 = vst.msk [vmem:[%s1173_s28 + $0x8] sm:$0xff] %vm185_vm0, %v1108_v0 }
  0x19   : > { %188 = vst.msk [vmem:[%s1173_s28 + $0x10] sm:$0xff] %vm185_vm0, %v1108_v0 }
  0x1a   : > { %189 = vst.msk [vmem:[%s1173_s28 + $0x18] sm:$0xff] %vm185_vm0, %v1108_v0 }
  0x1b   : > { %190 = vst.msk [vmem:[%s1173_s28 + $0x20] sm:$0xff] %vm185_vm0, %v1108_v0 }
  0x1c   : > { %191 = vst.msk [vmem:[%s1173_s28 + $0x28] sm:$0xff] %vm185_vm0, %v1108_v0 }
  0x1d   : > { %192 = vst.msk [vmem:[%s1173_s28 + $0x30] sm:$0xff] %vm185_vm0, %v1108_v0 }
  0x1e   : > { %193 = vst.msk [vmem:[%s1173_s28 + $0x38] sm:$0xff] %vm185_vm0, %v1108_v0 }
  0x1f PF: > { %v198_v1 = vld [vmem:[%s1163_s21 + $0x20] sm:$0xff]  ;;  %v1109_v3 = vmov 0   ;;  %v195_v4 = vld [vmem:[%s1163_s21 + $0x8] sm:$0xff]  ;;  %v270_v5 = vld [vmem:[%s1168_s25 + $0x78] sm:$0xff]  ;;  %s954_s29 = sshll.u32 %s1090_s9, 7  ;;  %vm853_vm9 = vcmask 261120  }
  0x20   : > { %v194_v2 = vld [vmem:[%s1163_s21] sm:$0xff]  ;;  %1066 = vset.pattern.permute.xlu1 %v1109_v3  ;;  %1065 = vset.pattern.permute.xlu0 %v1109_v3  ;;  %v1188_v6 = vand.u32 4294901760, %v270_v5  ;;  %v269_v7 = vld [vmem:[%s1168_s25 + $0x70] sm:$0xff]  ;;  %v268_v8 = vld [vmem:[%s1168_s25 + $0x68] sm:$0xff] }
  0x21   : > { %220 = vperm.xlu0 %1065, %v198_v1   ;;  %208 = vperm.xlu1 %1066, %v194_v2   ;;  %v267_v9 = vld [vmem:[%s1168_s25 + $0x60] sm:$0xff]  ;;  %v1193_v10 = vand.u32 4294901760, %v269_v7  ;;  %v1195_v11 = vand.u32 4294901760, %v268_v8  ;;  %v266_v13 = vld [vmem:[%s1168_s25 + $0x58] sm:$0xff]  ;;  %v265_v14 = vld [vmem:[%s1168_s25 + $0x50] sm:$0xff] }
  0x22   : > { %1067 = vset.pattern.permute.xlu2 %v1109_v3  ;;  %v1197_v12 = vand.u32 4294901760, %v267_v9  ;;  %v264_v15 = vld [vmem:[%s1168_s25 + $0x48] sm:$0xff]  ;;  %v1203_v16 = vsub.f32 %v270_v5, %v1188_v6  ;;  %v1205_v17 = vand.u32 4294901760, %v266_v13  ;;  %272 = vmatpush.msra.mxu0 %v1188_v6  ;;  %v1209_v18 = vand.u32 4294901760, %v265_v14  ;;  %v263_v20 = vld [vmem:[%s1168_s25 + $0x40] sm:$0xff]  ;;  %v200_v26 = vld [vmem:[%s1163_s21 + $0x30] sm:$0xff] }
  0x23   : > { %211 = vperm.xlu2 %1067, %v195_v4   ;;  %989 = vmatpush.msra.mxu2 %v1188_v6  ;;  %v1211_v19 = vand.u32 4294901760, %v264_v15  ;;  %v1215_v21 = vsub.f32 %v269_v7, %v1193_v10  ;;  %v1218_v22 = vsub.f32 %v268_v8, %v1195_v11  ;;  %v1223_v24 = vand.u32 4294901760, %v263_v20  ;;  %v199_v25 = vld [vmem:[%s1163_s21 + $0x28] sm:$0xff]  ;;  %v201_v34 = vld [vmem:[%s1163_s21 + $0x38] sm:$0xff]  ;;  %v261_v44 = vld [vmem:[%s1168_s25 + $0x30] sm:$0xff] }
  0x24   : > { %v1221_v23 = vsub.f32 %v267_v9, %v1197_v12  ;;  %v370_v27 = vand.u32 4294901760, %v1203_v16  ;;  %v1229_v28 = vsub.f32 %v266_v13, %v1205_v17  ;;  %v1232_v29 = vsub.f32 %v265_v14, %v1209_v18  ;;  %274 = vmatpush.msra.mxu0 %v1193_v10  ;;  %v262_v40 = vld [vmem:[%s1168_s25 + $0x38] sm:$0xff]  ;;  %v260_v45 = vld [vmem:[%s1168_s25 + $0x28] sm:$0xff]  ;;  %v259_v48 = vld [vmem:[%s1168_s25 + $0x20] sm:$0xff] }
  0x25   : > { %990 = vmatpush.msra.mxu2 %v1193_v10  ;;  %v376_v30 = vand.u32 4294901760, %v1215_v21  ;;  %v382_v31 = vand.u32 4294901760, %v1218_v22  ;;  %v1240_v33 = vsub.f32 %v264_v15, %v1211_v19  ;;  %v1256_v39 = vsub.f32 %v263_v20, %v1223_v24  ;;  %v258_v55 = vld [vmem:[%s1168_s25 + $0x18] sm:$0xff]  ;;  %v196_v56 = vld [vmem:[%s1163_s21 + $0x10] sm:$0xff]  ;;  %v256_v7 = vld [vmem:[%s1168_s25 + $0x8] sm:$0xff] }
  0x26   : > { %v388_v32 = vand.u32 4294901760, %v1221_v23  ;;  %v371_v35 = vsub.f32 %v1203_v16, %v370_v27  ;;  %v394_v36 = vand.u32 4294901760, %v1229_v28  ;;  %276 = vmatpush.msra.mxu0 %v1195_v11  ;;  %v400_v43 = vand.u32 4294901760, %v1232_v29  ;;  %v197_v57 = vld [vmem:[%s1163_s21 + $0x18] sm:$0xff]  ;;  %v257_v0 = vld [vmem:[%s1168_s25 + $0x10] sm:$0xff] }
  0x27   : > { %991 = vmatpush.msra.mxu2 %v1195_v11  ;;  %v377_v37 = vsub.f32 %v1215_v21, %v376_v30  ;;  %v383_v38 = vsub.f32 %v1218_v22, %v382_v31  ;;  %v406_v47 = vand.u32 4294901760, %v1240_v33  ;;  %v1272_v51 = vand.u32 4294901760, %v262_v40 }
  0x28   : > { %v372_v41 = vand.u32 4294901760, %v371_v35  ;;  %v389_v42 = vsub.f32 %v1221_v23, %v388_v32  ;;  %278 = vmatpush.msra.mxu0 %v1197_v12  ;;  %v395_v50 = vsub.f32 %v1229_v28, %v394_v36  ;;  %v412_v52 = vand.u32 4294901760, %v1256_v39 }
  0x29   : > { %223 = vperm.xlu0 %1065, %v199_v25   ;;  %226 = vperm.xlu1 %1066, %v200_v26   ;;  %v378_v46 = vand.u32 4294901760, %v377_v37  ;;  %v384_v49 = vand.u32 4294901760, %v383_v38  ;;  %v1277_v53 = vand.u32 4294901760, %v261_v44  ;;  %v1279_v54 = vand.u32 4294901760, %v260_v45 }
  0x2a   : > { %992 = vmatpush.msra.mxu2 %v1197_v12  ;;  %373 = vmatpush.msra.mxu1 %v372_v41  ;;  %v390_v58 = vand.u32 4294901760, %v389_v42  ;;  %v401_v59 = vsub.f32 %v1232_v29, %v400_v43  ;;  %v1288_v60 = vsub.f32 %v262_v40, %v1272_v51  ;;  %v1290_v61 = vand.u32 4294901760, %v259_v48 }
  0x2b   : > { %229 = vperm.xlu2 %1067, %v201_v34   ;;  %1005 = vmatpush.msra.mxu3 %v372_v41  ;;  %v407_v62 = vsub.f32 %v1240_v33, %v406_v47  ;;  %v1296_v63 = vsub.f32 %v261_v44, %v1277_v53  ;;  %v396_v1 = vand.u32 4294901760, %v395_v50  ;;  %v1303_v3 = vsub.f32 %v260_v45, %v1279_v54 }
  0x2c   : > { %280 = vmatpush.msra.mxu0 %v1205_v17  ;;  %993 = vmatpush.msra.mxu2 %v1205_v17  ;;  %v418_v2 = vand.u32 4294901760, %v1288_v60  ;;  %v1305_v4 = vand.u32 4294901760, %v258_v55  ;;  %v413_v5 = vsub.f32 %v1256_v39, %v412_v52  ;;  %v402_v8 = vand.u32 4294901760, %v401_v59 }
  0x2d   : > { %379 = vmatpush.msra.mxu1 %v378_v46  ;;  %1006 = vmatpush.msra.mxu3 %v378_v46  ;;  %v424_v9 = vand.u32 4294901760, %v1296_v63  ;;  %v1313_v13 = vsub.f32 %v259_v48, %v1290_v61  ;;  %v1315_v14 = vand.u32 4294901760, %v257_v0  ;;  %v408_v15 = vand.u32 4294901760, %v407_v62 }
  0x2e   : > { %282 = vmatpush.msra.mxu0 %v1209_v18  ;;  %994 = vmatpush.msra.mxu2 %v1209_v18  ;;  %v419_v20 = vsub.f32 %v1288_v60, %v418_v2  ;;  %v430_v25 = vand.u32 4294901760, %v1303_v3  ;;  %v1324_v26 = vsub.f32 %v258_v55, %v1305_v4  ;;  %v1326_v34 = vand.u32 4294901760, %v256_v7 }
  0x2f   : > { %385 = vmatpush.msra.mxu1 %v384_v49  ;;  %1007 = vmatpush.msra.mxu3 %v384_v49  ;;  %v414_v35 = vand.u32 4294901760, %v413_v5  ;;  %v425_v37 = vsub.f32 %v1296_v63, %v424_v9  ;;  %v436_v38 = vand.u32 4294901760, %v1313_v13  ;;  %v1335_v40 = vsub.f32 %v257_v0, %v1315_v14  ;;  %v255_v5 = vld [vmem:[%s1168_s25] sm:$0xff] }
  0x30   : > { %284 = vmatpush.msra.mxu0 %v1211_v19  ;;  %995 = vmatpush.msra.mxu2 %v1211_v19  ;;  %v420_v41 = vand.u32 4294901760, %v419_v20  ;;  %v431_v42 = vsub.f32 %v1303_v3, %v430_v25  ;;  %v442_v44 = vand.u32 4294901760, %v1324_v26  ;;  %v1344_v45 = vsub.f32 %v256_v7, %v1326_v34 }
  0x31   : > { %214 = vperm.xlu0 %1065, %v196_v56   ;;  %217 = vperm.xlu1 %1066, %v197_v57   ;;  %v426_v46 = vand.u32 4294901760, %v425_v37  ;;  %v437_v48 = vsub.f32 %v1313_v13, %v436_v38  ;;  %v448_v49 = vand.u32 4294901760, %v1335_v40  ;;  %v1373_v7 = vand.u32 4294901760, %v255_v5 }
  0x32   : > { %391 = vmatpush.msra.mxu1 %v390_v58  ;;  %1008 = vmatpush.msra.mxu3 %v390_v58  ;;  %v432_v50 = vand.u32 4294901760, %v431_v42  ;;  %v443_v55 = vsub.f32 %v1324_v26, %v442_v44  ;;  %v454_v56 = vand.u32 4294901760, %v1344_v45 }
  0x33   : > { %286 = vmatpush.msra.mxu0 %v1223_v24  ;;  %996 = vmatpush.msra.mxu2 %v1223_v24  ;;  %v438_v57 = vand.u32 4294901760, %v437_v48  ;;  %v449_v58 = vsub.f32 %v1335_v40, %v448_v49 }
  0x34   : > { %397 = vmatpush.msra.mxu1 %v396_v1  ;;  %1009 = vmatpush.msra.mxu3 %v396_v1  ;;  %v444_v59 = vand.u32 4294901760, %v443_v55  ;;  %v455_v62 = vsub.f32 %v1344_v45, %v454_v56 }
  0x35   : > { %288 = vmatpush.msra.mxu0 %v1272_v51  ;;  %997 = vmatpush.msra.mxu2 %v1272_v51  ;;  %v450_v0 = vand.u32 4294901760, %v449_v58 }
  0x36   : > { %403 = vmatpush.msra.mxu1 %v402_v8  ;;  %1010 = vmatpush.msra.mxu3 %v402_v8  ;;  %v456_v1 = vand.u32 4294901760, %v455_v62  ;;  %v1376_v8 = vsub.f32 %v255_v5, %v1373_v7 }
  0x37   : > { %290 = vmatpush.msra.mxu0 %v1277_v53  ;;  %998 = vmatpush.msra.mxu2 %v1277_v53 }
  0x38   : > { %409 = vmatpush.msra.mxu1 %v408_v15  ;;  %1011 = vmatpush.msra.mxu3 %v408_v15  ;;  %v460_v15 = vand.u32 4294901760, %v1376_v8 }
  0x39   : > { %292 = vmatpush.msra.mxu0 %v1279_v54  ;;  %999 = vmatpush.msra.mxu2 %v1279_v54 }
  0x3a   : > { %415 = vmatpush.msra.mxu1 %v414_v35  ;;  %1012 = vmatpush.msra.mxu3 %v414_v35  ;;  %v461_v20 = vsub.f32 %v1376_v8, %v460_v15 }
  0x3b   : > { %294 = vmatpush.msra.mxu0 %v1290_v61  ;;  %1000 = vmatpush.msra.mxu2 %v1290_v61 }
  0x3c   : > { %421 = vmatpush.msra.mxu1 %v420_v41  ;;  %1013 = vmatpush.msra.mxu3 %v420_v41  ;;  %v462_v35 = vand.u32 4294901760, %v461_v20 }
  0x3d   : > { %296 = vmatpush.msra.mxu0 %v1305_v4  ;;  %1001 = vmatpush.msra.mxu2 %v1305_v4 }
  0x3e   : > { %427 = vmatpush.msra.mxu1 %v426_v46  ;;  %1014 = vmatpush.msra.mxu3 %v426_v46 }
  0x3f   : > { %298 = vmatpush.msra.mxu0 %v1315_v14  ;;  %1002 = vmatpush.msra.mxu2 %v1315_v14 }
  0x40   : > { %433 = vmatpush.msra.mxu1 %v432_v50  ;;  %1015 = vmatpush.msra.mxu3 %v432_v50 }
  0x41   : > { %300 = vmatpush.msra.mxu0 %v1326_v34  ;;  %1003 = vmatpush.msra.mxu2 %v1326_v34 }
  0x42   : > { %439 = vmatpush.msra.mxu1 %v438_v57  ;;  %1016 = vmatpush.msra.mxu3 %v438_v57 }
  0x43   : > { %302 = vmatpush.msra.mxu0 %v1373_v7  ;;  %1004 = vmatpush.msra.mxu2 %v1373_v7 }
  0x44   : > { %445 = vmatpush.msra.mxu1 %v444_v59  ;;  %1017 = vmatpush.msra.mxu3 %v444_v59 }
  0x45   : > { %499 = vmatpush.msrb.mxu2 %v1203_v16  ;;  %670 = vmatpush.msrb.mxu0 %v370_v27 }
  0x46   : > { %451 = vmatpush.msra.mxu1 %v450_v0  ;;  %1018 = vmatpush.msra.mxu3 %v450_v0 }
  0x47   : > { %502 = vmatpush.msrb.mxu2 %v1215_v21  ;;  %674 = vmatpush.msrb.mxu0 %v376_v30 }
  0x48   : > { %457 = vmatpush.msra.mxu1 %v456_v1  ;;  %1019 = vmatpush.msra.mxu3 %v456_v1 }
  0x49   : > { %505 = vmatpush.msrb.mxu2 %v1218_v22  ;;  %678 = vmatpush.msrb.mxu0 %v382_v31 }
  0x4a   : > { %463 = vmatpush.msra.mxu1 %v462_v35  ;;  %1020 = vmatpush.msra.mxu3 %v462_v35 }
  0x4b   : > { %508 = vmatpush.msrb.mxu2 %v1221_v23  ;;  %682 = vmatpush.msrb.mxu0 %v388_v32 }
  0x4c   : > { %587 = vmatpush.msrb.mxu3 %v1188_v6  ;;  %765 = vmatpush.msrb.mxu1 %v1188_v6  ;;  %v202_v6 = vlaneseq }
  0x4d   : > { %511 = vmatpush.msrb.mxu2 %v1229_v28  ;;  %686 = vmatpush.msrb.mxu0 %v394_v36 }
  0x4e   : > { %589 = vmatpush.msrb.mxu3 %v1193_v10  ;;  %767 = vmatpush.msrb.mxu1 %v1193_v10  ;;  %v203_v10 = vand.u32 127, %v202_v6 }
  0x4f   : > { %514 = vmatpush.msrb.mxu2 %v1232_v29  ;;  %690 = vmatpush.msrb.mxu0 %v400_v43 }
  0x50   : > { %591 = vmatpush.msrb.mxu3 %v1195_v11  ;;  %769 = vmatpush.msrb.mxu1 %v1195_v11  ;;  %v205_v11 = vstv %s954_s29 }
  0x51   : > { %517 = vmatpush.msrb.mxu2 %v1240_v33  ;;  %694 = vmatpush.msrb.mxu0 %v406_v47 }
  0x52   : > { %593 = vmatpush.msrb.mxu3 %v1197_v12  ;;  %771 = vmatpush.msrb.mxu1 %v1197_v12  ;;  %v1455_v12 = vadd.s32 %v205_v11, %v203_v10 }
  0x53   : > { %520 = vmatpush.msrb.mxu2 %v1256_v39  ;;  %698 = vmatpush.msrb.mxu0 %v412_v52 }
  0x54   : > { %595 = vmatpush.msrb.mxu3 %v1205_v17  ;;  %773 = vmatpush.msrb.mxu1 %v1205_v17 }
  0x55   : > { %523 = vmatpush.msrb.mxu2 %v1288_v60  ;;  %702 = vmatpush.msrb.mxu0 %v418_v2 }
  0x56   : > { %597 = vmatpush.msrb.mxu3 %v1209_v18  ;;  %775 = vmatpush.msrb.mxu1 %v1209_v18 }
  0x57   : > { %526 = vmatpush.msrb.mxu2 %v1296_v63  ;;  %706 = vmatpush.msrb.mxu0 %v424_v9 }
  0x58   : > { %599 = vmatpush.msrb.mxu3 %v1211_v19  ;;  %777 = vmatpush.msrb.mxu1 %v1211_v19  ;;  %v1110_v19 = vmov 0.0  }
  0x59   : > { %529 = vmatpush.msrb.mxu2 %v1303_v3  ;;  %710 = vmatpush.msrb.mxu0 %v430_v25 }
  0x5a   : > { %601 = vmatpush.msrb.mxu3 %v1223_v24  ;;  %779 = vmatpush.msrb.mxu1 %v1223_v24  ;;  %v1111_v24 = vmov 1.0  }
  0x5b   : > { %532 = vmatpush.msrb.mxu2 %v1313_v13  ;;  %714 = vmatpush.msrb.mxu0 %v436_v38 }
  0x5c   : > { %603 = vmatpush.msrb.mxu3 %v1272_v51  ;;  %781 = vmatpush.msrb.mxu1 %v1272_v51 }
  0x5d   : > { %535 = vmatpush.msrb.mxu2 %v1324_v26  ;;  %718 = vmatpush.msrb.mxu0 %v442_v44 }
  0x5e   : > { %605 = vmatpush.msrb.mxu3 %v1277_v53  ;;  %783 = vmatpush.msrb.mxu1 %v1277_v53 }
  0x5f   : > { %538 = vmatpush.msrb.mxu2 %v1335_v40  ;;  %722 = vmatpush.msrb.mxu0 %v448_v49 }
  0x60   : > { %607 = vmatpush.msrb.mxu3 %v1279_v54  ;;  %785 = vmatpush.msrb.mxu1 %v1279_v54 }
  0x61   : > { %541 = vmatpush.msrb.mxu2 %v1344_v45  ;;  %726 = vmatpush.msrb.mxu0 %v454_v56 }
  0x62   : > { %609 = vmatpush.msrb.mxu3 %v1290_v61  ;;  %787 = vmatpush.msrb.mxu1 %v1290_v61 }
  0x63   : > { %544 = vmatpush.msrb.mxu2 %v1376_v8  ;;  %730 = vmatpush.msrb.mxu0 %v460_v15 }
  0x64   : > { %611 = vmatpush.msrb.mxu3 %v1305_v4  ;;  %789 = vmatpush.msrb.mxu1 %v1305_v4 }
  0x66   : > { %613 = vmatpush.msrb.mxu3 %v1315_v14  ;;  %791 = vmatpush.msrb.mxu1 %v1315_v14 }
  0x68   : > { %615 = vmatpush.msrb.mxu3 %v1326_v34  ;;  %793 = vmatpush.msrb.mxu1 %v1326_v34 }
  0x6a   : > { %617 = vmatpush.msrb.mxu3 %v1373_v7  ;;  %795 = vmatpush.msrb.mxu1 %v1373_v7 }
  0x7d   : > { %v1457_v16 = vpop.permute.xlu2 %211 }
  0x7e   : > { %vm232_vm1 = vcmp.eq.s32.totalorder %v1455_v12, %v1457_v16 }
  0x7f   : > { %v956_v21 = vsel %vm232_vm1, 1.0, %v1110_v19 }
  0x80   : > { %v1496_v29 = vsub.f32 %v956_v21, %v956_v21 }
  0x82   : > { %v313_v36 = vand.u32 4294901760, %v1496_v29 }
  0x84   : > { %v314_v60 = vsub.f32 %v1496_v29, %v313_v36 }
  0x85   : > { %v1530_v61 = vpop.permute.xlu2 %229 }
  0x86   : > { %vm238_vm6 = vcmp.eq.s32.totalorder %v1455_v12, %v1530_v61  ;;  %v315_v3 = vand.u32 4294901760, %v314_v60 }
  0x87   : > { %v962_v26 = vsel %vm238_vm6, 1.0, %v1110_v19 }
  0x88   : > { %v360_v40 = vsub.f32 %v962_v26, %v962_v26 }
  0x8a   : > { %v361_v50 = vand.u32 4294901760, %v360_v40 }
  0x8c   : > { %v362_v56 = vsub.f32 %v360_v40, %v361_v50 }
  0x8e   : > { %v363_v58 = vand.u32 4294901760, %v362_v56 }
  0x93   : > { %v1465_v17 = vpop.permute.xlu0 %220  ;;  %v1467_v18 = vpop.permute.xlu1 %208 }
  0x94   : > { %vm235_vm2 = vcmp.eq.s32.totalorder %v1455_v12, %v1465_v17  ;;  %vm231_vm3 = vcmp.eq.s32.totalorder %v1455_v12, %v1467_v18 }
  0x95   : > { %v959_v22 = vsel %vm235_vm2, 1.0, %v1110_v19  ;;  %v955_v23 = vsel %vm231_vm3, 1.0, %v1110_v19  ;;  %963 = vmatmul.msk.f32.vlgmr.msra.gmra.mxu1 %vm231_vm3, %v1111_v24  ;;  %967 = vmatmul.msk.f32.vlgmr.msra.gmra.mxu3 %vm235_vm2, %v1111_v24 }
  0x96   : > { %v1492_v27 = vsub.f32 %v959_v22, %v959_v22  ;;  %v1494_v28 = vsub.f32 %v955_v23, %v955_v23 }
  0x98   : > { %v305_v30 = vand.u32 4294901760, %v1494_v28  ;;  %v337_v31 = vand.u32 4294901760, %v1492_v27 }
  0x9a   : > { %v306_v32 = vsub.f32 %v1494_v28, %v305_v30  ;;  %v338_v33 = vsub.f32 %v1492_v27, %v337_v31 }
  0x9b   : > { %v1505_v39 = vpop.permute.xlu0 %223  ;;  %v1507_v43 = vpop.permute.xlu1 %226 }
  0x9c   : > { %vm236_vm4 = vcmp.eq.s32.totalorder %v1455_v12, %v1505_v39  ;;  %vm237_vm5 = vcmp.eq.s32.totalorder %v1455_v12, %v1507_v43  ;;  %v307_v47 = vand.u32 4294901760, %v306_v32  ;;  %v339_v51 = vand.u32 4294901760, %v338_v33 }
  0x9d   : > { %v960_v52 = vsel %vm236_vm4, 1.0, %v1110_v19  ;;  %v961_v53 = vsel %vm237_vm5, 1.0, %v1110_v19  ;;  %964 = vmatmul.msk.f32.gmra.mxu1 %vm232_vm1, %v1111_v24  ;;  %968 = vmatmul.msk.f32.gmra.mxu3 %vm236_vm4, %v1111_v24 }
  0x9e   : > { %v1527_v54 = vsub.f32 %v960_v52, %v960_v52  ;;  %308 = vmatmul.f32.vlgmr.msra.gmra.mxu0 %v307_v47  ;;  %340 = vmatmul.f32.vlgmr.msra.gmra.mxu2 %v339_v51  ;;  %v1532_v63 = vsub.f32 %v961_v53, %v961_v53 }
  0xa0   : > { %v345_v2 = vand.u32 4294901760, %v1527_v54  ;;  %v353_v25 = vand.u32 4294901760, %v1532_v63 }
  0xa2   : > { %v346_v4 = vsub.f32 %v1527_v54, %v345_v2  ;;  %v354_v44 = vsub.f32 %v1532_v63, %v353_v25 }
  0xa3   : > { %v215_v9 = vpop.permute.xlu0 %214  ;;  %v218_v13 = vpop.permute.xlu1 %217 }
  0xa4   : > { %vm233_vm7 = vcmp.eq.s32.totalorder %v1455_v12, %v215_v9  ;;  %vm234_vm8 = vcmp.eq.s32.totalorder %v1455_v12, %v218_v13  ;;  %v347_v14 = vand.u32 4294901760, %v346_v4  ;;  %v355_v48 = vand.u32 4294901760, %v354_v44 }
  0xa5   : > { %v957_v34 = vsel %vm233_vm7, 1.0, %v1110_v19  ;;  %v958_v37 = vsel %vm234_vm8, 1.0, %v1110_v19  ;;  %965 = vmatmul.msk.f32.gmra.mxu1 %vm233_vm7, %v1111_v24  ;;  %969 = vmatmul.msk.f32.gmra.mxu3 %vm237_vm5, %v1111_v24 }
  0xa6   : > { %v320_v38 = vsub.f32 %v957_v34, %v957_v34  ;;  %316 = vmatmul.f32.gmra.mxu0 %v315_v3  ;;  %348 = vmatmul.f32.gmra.mxu2 %v347_v14  ;;  %v328_v41 = vsub.f32 %v958_v37, %v958_v37  ;;  %v830_v3 = vld [vmem:[%s1173_s28 + $0x8] sm:$0xff] }
  0xa8   : > { %v321_v42 = vand.u32 4294901760, %v320_v38  ;;  %v329_v49 = vand.u32 4294901760, %v328_v41 }
  0xaa   : > { %v322_v45 = vsub.f32 %v320_v38, %v321_v42  ;;  %v330_v55 = vsub.f32 %v328_v41, %v329_v49 }
  0xac   : > { %v323_v46 = vand.u32 4294901760, %v322_v45  ;;  %v331_v57 = vand.u32 4294901760, %v330_v55 }
  0xad   : > { %966 = vmatmul.msk.f32.gmra.mxu1 %vm234_vm8, %v1111_v24  ;;  %970 = vmatmul.msk.f32.gmra.mxu3 %vm238_vm6, %v1111_v24 }
  0xae   : > { %324 = vmatmul.f32.gmra.mxu0 %v323_v46  ;;  %356 = vmatmul.f32.gmra.mxu2 %v355_v48 }
  0xb5   : > { %621 = vmatmul.f32.vlgmr.msrb.gmra.mxu3 %v305_v30  ;;  %979 = vmatmul.msk.f32.vlgmr.msrb.gmra.mxu1 %vm231_vm3, %v1111_v24 }
  0xb6   : > { %332 = vmatmul.f32.gmra.mxu0 %v331_v57  ;;  %364 = vmatmul.f32.gmra.mxu2 %v363_v58 }
  0xbd   : > { %627 = vmatmul.f32.gmra.mxu3 %v313_v36  ;;  %980 = vmatmul.msk.f32.gmra.mxu1 %vm232_vm1, %v1111_v24  ;;  %v829_v36 = vld [vmem:[%s1173_s28] sm:$0xff] }
  0xbe   : > { %547 = vmatmul.f32.vlgmr.msrb.gmra.mxu2 %v1494_v28  ;;  %971 = vmatmul.msk.f32.vlgmr.msrb.gmra.mxu0 %vm231_vm3, %v1111_v24 }
  0xc5   : > { %633 = vmatmul.f32.gmra.mxu3 %v321_v42  ;;  %981 = vmatmul.msk.f32.gmra.mxu1 %vm233_vm7, %v1111_v24  ;;  %v831_v42 = vld [vmem:[%s1173_s28 + $0x10] sm:$0xff] }
  0xc6   : > { %552 = vmatmul.f32.gmra.mxu2 %v1496_v29  ;;  %972 = vmatmul.msk.f32.gmra.mxu0 %vm232_vm1, %v1111_v24 }
  0xcd   : > { %639 = vmatmul.f32.gmra.mxu3 %v329_v49  ;;  %982 = vmatmul.msk.f32.gmra.mxu1 %vm234_vm8, %v1111_v24 }
  0xce   : > { %557 = vmatmul.f32.gmra.mxu2 %v320_v38  ;;  %973 = vmatmul.msk.f32.gmra.mxu0 %vm233_vm7, %v1111_v24 }
  0xd5   : > { %645 = vmatmul.f32.gmra.mxu3 %v337_v31  ;;  %983 = vmatmul.msk.f32.gmra.mxu1 %vm235_vm2, %v1111_v24 }
  0xd6   : > { %562 = vmatmul.f32.gmra.mxu2 %v328_v41  ;;  %974 = vmatmul.msk.f32.gmra.mxu0 %vm234_vm8, %v1111_v24 }
  0xdd   : > { %651 = vmatmul.f32.gmra.mxu3 %v345_v2  ;;  %984 = vmatmul.msk.f32.gmra.mxu1 %vm236_vm4, %v1111_v24 }
  0xde   : > { %567 = vmatmul.f32.gmra.mxu2 %v1492_v27  ;;  %975 = vmatmul.msk.f32.gmra.mxu0 %vm235_vm2, %v1111_v24 }
  0xe5   : > { %657 = vmatmul.f32.gmra.mxu3 %v353_v25  ;;  %985 = vmatmul.msk.f32.gmra.mxu1 %vm237_vm5, %v1111_v24 }
  0xe6   : > { %572 = vmatmul.f32.gmra.mxu2 %v1527_v54  ;;  %976 = vmatmul.msk.f32.gmra.mxu0 %vm236_vm4, %v1111_v24 }
  0xed   : > { %663 = vmatmul.f32.gmra.mxu3 %v361_v50  ;;  %986 = vmatmul.msk.f32.gmra.mxu1 %vm238_vm6, %v1111_v24 }
  0xee   : > { %577 = vmatmul.f32.gmra.mxu2 %v1532_v63  ;;  %977 = vmatmul.msk.f32.gmra.mxu0 %vm237_vm5, %v1111_v24 }
  0xf6   : > { %582 = vmatmul.f32.gmra.mxu2 %v360_v40  ;;  %978 = vmatmul.msk.f32.gmra.mxu0 %vm238_vm6, %v1111_v24 }
 0x112   : > { %v466_v59 = vpop.f32.mrf.mxu1 }
 0x118   : > { %v1630_v62 = vpop.f32.mrf.mxu3 }
 0x11a   : > { %v470_v0 = vpop.f32.mrf.mxu1 }
 0x11b   : > { %v309_v1 = vpop.f32.mrf.mxu0 }
 0x11c   : > { %v467_v22 = vadd.f32 %v466_v59, %v309_v1 }
 0x120   : > { %v1632_v5 = vpop.f32.mrf.mxu3 }
 0x121   : > { %v341_v7 = vpop.f32.mrf.mxu2 }
 0x122   : > { %v474_v15 = vpop.f32.mrf.mxu1  ;;  %v483_v57 = vadd.f32 %v1630_v62, %v341_v7 }
 0x123   : > { %v317_v8 = vpop.f32.mrf.mxu0 }
 0x124   : > { %v471_v32 = vadd.f32 %v470_v0, %v317_v8  ;;  %v832_v0 = vld [vmem:[%s1173_s28 + $0x18] sm:$0xff] }
 0x128   : > { %v1634_v20 = vpop.f32.mrf.mxu3 }
 0x129   : > { %v1636_v35 = vpop.f32.mrf.mxu2 }
 0x12a   : > { %v478_v10 = vpop.f32.mrf.mxu1 }
 0x12b   : > { %v325_v6 = vpop.f32.mrf.mxu0 }
 0x12c   : > { %v475_v63 = vadd.f32 %v474_v15, %v325_v6 }
 0x130   : > { %v1638_v11 = vpop.f32.mrf.mxu3 }
 0x131   : > { %v1640_v12 = vpop.f32.mrf.mxu2 }
 0x132   : > { %v798_v18 = vpop.f32.mrf.mxu1 }
 0x133   : > { %v333_v16 = vpop.f32.mrf.mxu0 }
 0x134   : > { %v479_v40 = vadd.f32 %v478_v10, %v333_v16 }
 0x138   : > { %v622_v17 = vpop.f32.mrf.mxu3 }
 0x139   : > { %v1642_v19 = vpop.f32.mrf.mxu2 }
 0x13a   : > { %v802_v28 = vpop.f32.mrf.mxu1 }
 0x13b   : > { %v733_v21 = vpop.f32.mrf.mxu0 }
 0x140   : > { %v628_v23 = vpop.f32.mrf.mxu3 }
 0x141   : > { %v548_v24 = vpop.f32.mrf.mxu2 }
 0x142   : > { %v549_v27 = vadd.f32 %v548_v24, %v467_v22  ;;  %v806_v60 = vpop.f32.mrf.mxu1  ;;  %v833_v22 = vld [vmem:[%s1173_s28 + $0x20] sm:$0xff] }
 0x143   : > { %v737_v29 = vpop.f32.mrf.mxu0 }
 0x144   : > { %v623_v30 = vadd.f32 %v622_v17, %v549_v27 }
 0x146   : > { %v734_v31 = vadd.f32 %v733_v21, %v623_v30 }
 0x148   : > { %v799_v33 = vadd.f32 %v798_v18, %v734_v31  ;;  %v634_v39 = vpop.f32.mrf.mxu3  ;;  %v487_v18 = vadd.f32 %v1632_v5, %v1636_v35  ;;  %v491_v31 = vadd.f32 %v1634_v20, %v1640_v12  ;;  %v834_v5 = vld [vmem:[%s1173_s28 + $0x28] sm:$0xff]  ;;  %v835_v20 = vld [vmem:[%s1173_s28 + $0x30] sm:$0xff] }
 0x149   : > { %v553_v43 = vpop.f32.mrf.mxu2 }
 0x14a   : > { %v837_v47 = vmul.f32 5.656854, %v799_v33  ;;  %v554_v51 = vadd.f32 %v553_v43, %v471_v32  ;;  %v810_v38 = vpop.f32.mrf.mxu1 }
 0x14b   : > { %v741_v52 = vpop.f32.mrf.mxu0 }
 0x14c   : > { %v845_v53 = vadd.f32 %v837_v47, %v829_v36  ;;  %v629_v54 = vadd.f32 %v628_v23, %v554_v51 }
 0x14e   : > { %854 = vst.msk [vmem:[%s1173_s28] sm:$0xff] %vm853_vm9, %v845_v53  ;;  %v738_v61 = vadd.f32 %v737_v29, %v629_v54  ;;  %v495_v54 = vadd.f32 %v1638_v11, %v1642_v19 }
 0x150   : > { %v803_v2 = vadd.f32 %v802_v28, %v738_v61  ;;  %v640_v14 = vpop.f32.mrf.mxu3 }
 0x151   : > { %v558_v4 = vpop.f32.mrf.mxu2 }
 0x152   : > { %v838_v9 = vmul.f32 5.656854, %v803_v2  ;;  %v559_v13 = vadd.f32 %v558_v4, %v475_v63  ;;  %v814_v59 = vpop.f32.mrf.mxu1 }
 0x153   : > { %v745_v34 = vpop.f32.mrf.mxu0 }
 0x154   : > { %v846_v25 = vadd.f32 %v838_v9, %v830_v3  ;;  %v635_v26 = vadd.f32 %v634_v39, %v559_v13 }
 0x156   : > { %855 = vst.msk [vmem:[%s1173_s28 + $0x8] sm:$0xff] %vm853_vm9, %v846_v25  ;;  %v742_v37 = vadd.f32 %v741_v52, %v635_v26  ;;  %v836_v26 = vld [vmem:[%s1173_s28 + $0x38] sm:$0xff] }
 0x158   : > { %v807_v41 = vadd.f32 %v806_v60, %v742_v37  ;;  %v646_v50 = vpop.f32.mrf.mxu3 }
 0x159   : > { %v563_v44 = vpop.f32.mrf.mxu2 }
 0x15a   : > { %v839_v45 = vmul.f32 5.656854, %v807_v41  ;;  %v564_v46 = vadd.f32 %v563_v44, %v479_v40  ;;  %v818_v27 = vpop.f32.mrf.mxu1 }
 0x15b   : > { %v749_v56 = vpop.f32.mrf.mxu0 }
 0x15c   : > { %v847_v48 = vadd.f32 %v839_v45, %v831_v42  ;;  %v641_v49 = vadd.f32 %v640_v14, %v564_v46 }
 0x15e   : > { %856 = vst.msk [vmem:[%s1173_s28 + $0x10] sm:$0xff] %vm853_vm9, %v847_v48  ;;  %v746_v55 = vadd.f32 %v745_v34, %v641_v49 }
 0x160   : > { %v811_v58 = vadd.f32 %v810_v38, %v746_v55  ;;  %v652_v17 = vpop.f32.mrf.mxu3 }
 0x161   : > { %v568_v1 = vpop.f32.mrf.mxu2 }
 0x162   : > { %v840_v8 = vmul.f32 5.656854, %v811_v58  ;;  %v569_v15 = vadd.f32 %v568_v1, %v483_v57  ;;  %v822_v52 = vpop.f32.mrf.mxu1 }
 0x163   : > { %v753_v62 = vpop.f32.mrf.mxu0 }
 0x164   : > { %v848_v6 = vadd.f32 %v840_v8, %v832_v0  ;;  %v647_v10 = vadd.f32 %v646_v50, %v569_v15 }
 0x166   : > { %857 = vst.msk [vmem:[%s1173_s28 + $0x18] sm:$0xff] %vm853_vm9, %v848_v6  ;;  %v750_v16 = vadd.f32 %v749_v56, %v647_v10 }
 0x168   : > { %v815_v21 = vadd.f32 %v814_v59, %v750_v16  ;;  %v658_v33 = vpop.f32.mrf.mxu3 }
 0x169   : > { %v573_v7 = vpop.f32.mrf.mxu2 }
 0x16a   : > { %v841_v23 = vmul.f32 5.656854, %v815_v21  ;;  %v574_v24 = vadd.f32 %v573_v7, %v487_v18  ;;  %v826_v14 = vpop.f32.mrf.mxu1 }
 0x16b   : > { %v757_v43 = vpop.f32.mrf.mxu0 }
 0x16c   : > { %v849_v28 = vadd.f32 %v841_v23, %v833_v22  ;;  %v653_v29 = vadd.f32 %v652_v17, %v574_v24 }
 0x16e   : > { %858 = vst.msk [vmem:[%s1173_s28 + $0x20] sm:$0xff] %vm853_vm9, %v849_v28  ;;  %v754_v30 = vadd.f32 %v753_v62, %v653_v29 }
 0x170   : > { %v819_v32 = vadd.f32 %v818_v27, %v754_v30  ;;  %v664_v2 = vpop.f32.mrf.mxu3 }
 0x171   : > { %v578_v35 = vpop.f32.mrf.mxu2 }
 0x172   : > { %v842_v36 = vmul.f32 5.656854, %v819_v32  ;;  %v579_v39 = vadd.f32 %v578_v35, %v491_v31 }
 0x173   : > { %v761_v9 = vpop.f32.mrf.mxu0 }
 0x174   : > { %v850_v47 = vadd.f32 %v842_v36, %v834_v5  ;;  %v659_v51 = vadd.f32 %v658_v33, %v579_v39 }
 0x176   : > { %859 = vst.msk [vmem:[%s1173_s28 + $0x28] sm:$0xff] %vm853_vm9, %v850_v47  ;;  %v758_v53 = vadd.f32 %v757_v43, %v659_v51 }
 0x178   : > { %v823_v60 = vadd.f32 %v822_v52, %v758_v53 }
 0x179   : > { %v583_v12 = vpop.f32.mrf.mxu2 }
 0x17a   : > { %v843_v61 = vmul.f32 5.656854, %v823_v60  ;;  %v584_v63 = vadd.f32 %v583_v12, %v495_v54 }
 0x17c   : > { %v851_v3 = vadd.f32 %v843_v61, %v835_v20  ;;  %v665_v4 = vadd.f32 %v664_v2, %v584_v63 }
 0x17e   : > { %860 = vst.msk [vmem:[%s1173_s28 + $0x30] sm:$0xff] %vm853_vm9, %v851_v3  ;;  %v762_v13 = vadd.f32 %v761_v9, %v665_v4 }
 0x180   : > { %v827_v25 = vadd.f32 %v826_v14, %v762_v13 }
 0x182   : > { %v844_v34 = vmul.f32 5.656854, %v827_v25 }
 0x184   : > { %v852_v37 = vadd.f32 %v844_v34, %v836_v26 }
 0x186   : > { %861 = vst.msk [vmem:[%s1173_s28 + $0x38] sm:$0xff] %vm853_vm9, %v852_v37 }
 0x187 PF: > { %s12_s13 = sadd.s32 1, %s1106_s13   ;;  %s1693_s9 = smov %s1098_s11 }
 0x188   : > { %p9_p8 = scmp.ge.s32.totalorder %s12_s13, 6   ;;  %s1694_s10 = smov %s1102_s12 }
 0x189   : > { %s1695_s11 = smov %s1698_s14  ;;  %s1696_s12 = smov %s1702_s15 }
 0x18a   :  { %11 = sbr.rel (!%p9_p8) target bundleno = 3 (0x3), region = 65 }

</bundles_post_ra>
